<compile_context>
chip_gen: v7x
topology: tpu7x:2x2x1
jax: 0.10.0
libtpu: 0.0.40
codegen_flags: <defaults>
</compile_context>

<pallas_src>
import functools

import jax
import jax.numpy as jnp
from jax.experimental import pallas as pl
from jax.experimental.pallas import tpu as pltpu


def _round_up(n, m):
    return ((n + m - 1) // m) * m


def _cdm_kernel(xc_ref, t_ref,
                wt1_ref, bt1_ref, wt2_ref, bt2_ref,
                w1xc_ref, w1t_ref, b1_ref,
                w2_ref, b2_ref, w3_ref, b3_ref,
                o_ref):
    f32 = jnp.float32
    bf16 = jnp.bfloat16

    # --- time embedding: Linear(1, T) -> ReLU -> Linear(T, T) ---------------
    t = t_ref[...]                                        # (TB, 1) f32
    # Linear with a single input feature == broadcasted scale + bias (VPU, f32)
    h_t = t * wt1_ref[...] + bt1_ref[...]                 # (TB, T)
    h_t = jnp.maximum(h_t, 0.0)
    temb = jnp.dot(h_t.astype(bf16), wt2_ref[...],
                   preferred_element_type=f32) + bt2_ref[...]   # (TB, T) f32

    # --- fc1 on concat([x, cond, time_emb]) as two split matmuls ------------
    h1 = (jnp.dot(xc_ref[...], w1xc_ref[...], preferred_element_type=f32)
          + jnp.dot(temb.astype(bf16), w1t_ref[...], preferred_element_type=f32)
          + b1_ref[...])                                  # (TB, H) f32
    h1 = jnp.maximum(h1, 0.0)

    # --- fc2 -> ReLU ----------------------------------------------------------
    h2 = jnp.dot(h1.astype(bf16), w2_ref[...],
                 preferred_element_type=f32) + b2_ref[...]
    h2 = jnp.maximum(h2, 0.0)

    # --- fc3 (output columns zero-padded to 128 lanes) ------------------------
    out = jnp.dot(h2.astype(bf16), w3_ref[...],
                  preferred_element_type=f32) + b3_ref[...]
    o_ref[...] = out.astype(o_ref.dtype)


def conditional_diffusion_forward(x, condition, time, kparams, *, tb=512):
    """x: (B, input_dim), condition: (B, condition_dim), time: (B,) float32.

    `kparams` comes from prepare_params() (bf16 MXU weights, fused/padded).
    """
    B, input_dim = x.shape

    # fuse x & cond outside the kernel; cast MXU activation input to bf16
    xc = jnp.concatenate([x.astype(jnp.float32),
                          condition.astype(jnp.float32)], axis=-1)
    xc = xc.astype(jnp.bfloat16)                          # (B, in+cond)
    t2 = time.reshape(B, 1).astype(jnp.float32)           # torch: unsqueeze(-1)

    # batch tiling: TB rows per grid step (multiple of 8), pad B if needed
    tb = max(8, min(tb, _round_up(B, 8)))
    b_pad = _round_up(B, tb)
    if b_pad != B:
        xc = jnp.pad(xc, ((0, b_pad - B), (0, 0)))
        t2 = jnp.pad(t2, ((0, b_pad - B), (0, 0)))

    n_out_pad = kparams["w3"].shape[1]                    # 128 (lane-dense)
    xc_dim = xc.shape[1]

    weights = (kparams["wt1"], kparams["bt1"], kparams["wt2"], kparams["bt2"],
               kparams["w1xc"], kparams["w1t"], kparams["b1"],
               kparams["w2"], kparams["b2"], kparams["w3"], kparams["b3"])

    act_map = lambda i: (i, 0)       # tiled along batch
    const_map = lambda i: (0, 0)     # VMEM-resident across grid steps

    out = pl.pallas_call(
        _cdm_kernel,
        out_shape=jax.ShapeDtypeStruct((b_pad, n_out_pad), jnp.float32),
        grid=(b_pad // tb,),
        in_specs=[pl.BlockSpec((tb, xc_dim), act_map),
                  pl.BlockSpec((tb, 1), act_map)]
                 + [pl.BlockSpec(w.shape, const_map) for w in weights],
        out_specs=pl.BlockSpec((tb, n_out_pad), act_map),
        compiler_params=pltpu.CompilerParams(
            dimension_semantics=("parallel",)),
    )(xc, t2, *weights)

    return out[:B, :input_dim].astype(x.dtype)


def init_params(key, input_dim, condition_dim, time_dim=128, hidden_dim=128):
    """Deterministic synthetic parameters; shapes mirror the nn.Module
    (weights stored (in_features, out_features))."""
    ks = jax.random.split(key, 10)

    def lin(kw, kb, fan_in, fan_out):
        bound = 1.0 / jnp.sqrt(fan_in)
        w = jax.random.uniform(kw, (fan_in, fan_out), jnp.float32, -bound, bound)
        b = jax.random.uniform(kb, (1, fan_out), jnp.float32, -bound, bound)
        return w, b

    wt1, bt1 = lin(ks[0], ks[1], 1, time_dim)             # Linear(1, time_dim)
    wt2, bt2 = lin(ks[2], ks[3], time_dim, time_dim)      # Linear(time_dim, time_dim)
    cat_dim = input_dim + condition_dim + time_dim
    w1, b1 = lin(ks[4], ks[5], cat_dim, hidden_dim)       # fc1
    w2, b2 = lin(ks[6], ks[7], hidden_dim, hidden_dim)    # fc2
    w3, b3 = lin(ks[8], ks[9], hidden_dim, input_dim)     # fc3

    return dict(wt1=wt1, bt1=bt1, wt2=wt2, bt2=bt2,
                w1=w1, b1=b1, w2=w2, b2=b2, w3=w3, b3=b3)


def prepare_params(p, input_dim, condition_dim):
    """Convert module params to kernel-ready params:
      * split fc1 weight row-wise into [x|cond] part and time_emb part,
      * cast MXU weights to bf16 (biases + the K=1 time layer stay f32),
      * zero-pad fc3 output columns to 128 for a lane-dense store."""
    bf16 = jnp.bfloat16
    xc_dim = input_dim + condition_dim
    hidden_dim, n_out = p["w3"].shape
    n_pad = _round_up(max(n_out, 128), 128)

    w3p = jnp.zeros((hidden_dim, n_pad), jnp.float32).at[:, :n_out].set(p["w3"])
    b3p = jnp.zeros((1, n_pad), jnp.float32).at[:, :n_out].set(p["b3"])

    return {
        "wt1": p["wt1"], "bt1": p["bt1"],                 # f32 (elementwise path)
        "wt2": p["wt2"].astype(bf16), "bt2": p["bt2"],
        "w1xc": p["w1"][:xc_dim].astype(bf16),
        "w1t": p["w1"][xc_dim:].astype(bf16),
        "b1": p["b1"],
        "w2": p["w2"].astype(bf16), "b2": p["b2"],
        "w3": w3p.astype(bf16), "b3": b3p,
    }


def _reference_f32(x, condition, time, p):
    """Pure-JAX f32 reference mirroring the PyTorch forward exactly."""
    t = time[:, None]
    h = jnp.maximum(t @ p["wt1"] + p["bt1"], 0.0)
    temb = h @ p["wt2"] + p["bt2"]
    cat = jnp.concatenate([x, condition, temb], axis=-1)
    h1 = jnp.maximum(cat @ p["w1"] + p["b1"], 0.0)
    h2 = jnp.maximum(h1 @ p["w2"] + p["b2"], 0.0)
    return h2 @ p["w3"] + p["b3"]


def _reference_bf16(x, condition, time, p):
    """Pure-JAX reference with the same bf16-operand / f32-accumulate scheme
    the kernel uses (for a tight tolerance check)."""
    bf16, f32 = jnp.bfloat16, jnp.float32
    xc_dim = x.shape[1] + condition.shape[1]
    t = time[:, None]
    h = jnp.maximum(t * p["wt1"] + p["bt1"], 0.0)
    temb = jnp.dot(h.astype(bf16), p["wt2"].astype(bf16),
                   preferred_element_type=f32) + p["bt2"]
    xc = jnp.concatenate([x, condition], axis=-1).astype(bf16)
    h1 = (jnp.dot(xc, p["w1"][:xc_dim].astype(bf16), preferred_element_type=f32)
          + jnp.dot(temb.astype(bf16), p["w1"][xc_dim:].astype(bf16),
                    preferred_element_type=f32)
          + p["b1"])
    h1 = jnp.maximum(h1, 0.0)
    h2 = jnp.maximum(jnp.dot(h1.astype(bf16), p["w2"].astype(bf16),
                             preferred_element_type=f32) + p["b2"], 0.0)
    return jnp.dot(h2.astype(bf16), p["w3"].astype(bf16),
                   preferred_element_type=f32) + p["b3"]


if __name__ == "__main__":
    B, input_dim, condition_dim = 64, 16, 8
    time_dim, hidden_dim = 128, 128
    TB = 16   # small tile so the test exercises a multi-step grid

    key = jax.random.PRNGKey(0)
    k_p, k_x, k_c, k_t = jax.random.split(key, 4)

    params = init_params(k_p, input_dim, condition_dim, time_dim, hidden_dim)
    kparams = prepare_params(params, input_dim, condition_dim)

    x = jax.random.normal(k_x, (B, input_dim), jnp.float32)
    condition = jax.random.normal(k_c, (B, condition_dim), jnp.float32)
    time = jax.random.uniform(k_t, (B,), jnp.float32)

    fwd = functools.partial(conditional_diffusion_forward, tb=TB)
    out = fwd(x, condition, time, kparams)
    out = jax.block_until_ready(out)

    assert out.shape == (B, input_dim)

    ref_bf16 = _reference_bf16(x, condition, time, params)
    ref_f32 = _reference_f32(x, condition, time, params)
    assert jnp.allclose(out, ref_bf16, atol=1e-2, rtol=1e-2), \
        "mismatch vs bf16-mirrored reference"
    assert jnp.allclose(out, ref_f32, atol=5e-2, rtol=5e-2), \
        "mismatch vs f32 reference"

    print("KERNEL_OK")
</pallas_src>

<mosaic_0001>
module attributes {stable_mosaic.version = 11 : i64} {
  func.func @_cdm_kernel(%arg0: i32, %arg1: memref<16x24xbf16, #tpu.memory_space<vmem>>, %arg2: memref<16x1xf32, #tpu.memory_space<vmem>>, %arg3: memref<1x128xf32, #tpu.memory_space<vmem>>, %arg4: memref<1x128xf32, #tpu.memory_space<vmem>>, %arg5: memref<128x128xbf16, #tpu.memory_space<vmem>>, %arg6: memref<1x128xf32, #tpu.memory_space<vmem>>, %arg7: memref<24x128xbf16, #tpu.memory_space<vmem>>, %arg8: memref<128x128xbf16, #tpu.memory_space<vmem>>, %arg9: memref<1x128xf32, #tpu.memory_space<vmem>>, %arg10: memref<128x128xbf16, #tpu.memory_space<vmem>>, %arg11: memref<1x128xf32, #tpu.memory_space<vmem>>, %arg12: memref<128x128xbf16, #tpu.memory_space<vmem>>, %arg13: memref<1x128xf32, #tpu.memory_space<vmem>>, %arg14: memref<16x128xf32, #tpu.memory_space<vmem>>) attributes {dimension_semantics = [#tpu.dimension_semantics<parallel>], iteration_bounds = array<i64: 4>, scalar_prefetch = 0 : i64, scratch_operands = 0 : i64, tpu.core_type = #tpu.core_type<tc>, window_params = [{transform_indices = @transform_0, window_bounds = array<i64: 16, 24>}, {transform_indices = @transform_1, window_bounds = array<i64: 16, 1>}, {pipeline_mode = #tpu.pipeline_mode<synchronous>, transform_indices = @transform_2, window_bounds = array<i64: 1, 128>}, {pipeline_mode = #tpu.pipeline_mode<synchronous>, transform_indices = @transform_3, window_bounds = array<i64: 1, 128>}, {pipeline_mode = #tpu.pipeline_mode<synchronous>, transform_indices = @transform_4, window_bounds = array<i64: 128, 128>}, {pipeline_mode = #tpu.pipeline_mode<synchronous>, transform_indices = @transform_5, window_bounds = array<i64: 1, 128>}, {pipeline_mode = #tpu.pipeline_mode<synchronous>, transform_indices = @transform_6, window_bounds = array<i64: 24, 128>}, {pipeline_mode = #tpu.pipeline_mode<synchronous>, transform_indices = @transform_7, window_bounds = array<i64: 128, 128>}, {pipeline_mode = #tpu.pipeline_mode<synchronous>, transform_indices = @transform_8, window_bounds = array<i64: 1, 128>}, {pipeline_mode = #tpu.pipeline_mode<synchronous>, transform_indices = @transform_9, window_bounds = array<i64: 128, 128>}, {pipeline_mode = #tpu.pipeline_mode<synchronous>, transform_indices = @transform_10, window_bounds = array<i64: 1, 128>}, {pipeline_mode = #tpu.pipeline_mode<synchronous>, transform_indices = @transform_11, window_bounds = array<i64: 128, 128>}, {pipeline_mode = #tpu.pipeline_mode<synchronous>, transform_indices = @transform_12, window_bounds = array<i64: 1, 128>}, {transform_indices = @transform_13, window_bounds = array<i64: 16, 128>}]} {
    %c0 = arith.constant 0 : index
    %c0_0 = arith.constant 0 : index
    %0 = vector.load %arg2[%c0, %c0_0] : memref<16x1xf32, #tpu.memory_space<vmem>>, vector<16x1xf32>
    %c0_1 = arith.constant 0 : index
    %c0_2 = arith.constant 0 : index
    %1 = vector.load %arg3[%c0_1, %c0_2] : memref<1x128xf32, #tpu.memory_space<vmem>>, vector<1x128xf32>
    %2 = vector.broadcast %0 : vector<16x1xf32> to vector<16x128xf32>
    %3 = vector.broadcast %1 : vector<1x128xf32> to vector<16x128xf32>
    %4 = arith.mulf %2, %3 : vector<16x128xf32>
    %c0_3 = arith.constant 0 : index
    %c0_4 = arith.constant 0 : index
    %5 = vector.load %arg4[%c0_3, %c0_4] : memref<1x128xf32, #tpu.memory_space<vmem>>, vector<1x128xf32>
    %6 = vector.broadcast %5 : vector<1x128xf32> to vector<16x128xf32>
    %7 = arith.addf %4, %6 : vector<16x128xf32>
    %cst = arith.constant 0.000000e+00 : f32
    %8 = vector.broadcast %cst : f32 to vector<16x128xf32>
    %9 = arith.maximumf %7, %8 : vector<16x128xf32>
    %10 = arith.truncf %9 : vector<16x128xf32> to vector<16x128xbf16>
    %c0_5 = arith.constant 0 : index
    %c0_6 = arith.constant 0 : index
    %11 = vector.load %arg5[%c0_5, %c0_6] : memref<128x128xbf16, #tpu.memory_space<vmem>>, vector<128x128xbf16>
    %cst_7 = arith.constant dense<0.000000e+00> : vector<16x128xf32>
    %12 = tpu.matmul %10, %11, %cst_7 {dimension_numbers = #tpu.dot_dimension_numbers<[1], [0], [0], [1], [0, 0, 1, 1], [], []>} : vector<16x128xbf16>, vector<128x128xbf16>, vector<16x128xf32> -> vector<16x128xf32>
    %c0_8 = arith.constant 0 : index
    %c0_9 = arith.constant 0 : index
    %13 = vector.load %arg6[%c0_8, %c0_9] : memref<1x128xf32, #tpu.memory_space<vmem>>, vector<1x128xf32>
    %14 = vector.broadcast %13 : vector<1x128xf32> to vector<16x128xf32>
    %15 = arith.addf %12, %14 : vector<16x128xf32>
    %c0_10 = arith.constant 0 : index
    %c0_11 = arith.constant 0 : index
    %16 = vector.load %arg1[%c0_10, %c0_11] : memref<16x24xbf16, #tpu.memory_space<vmem>>, vector<16x24xbf16>
    %c0_12 = arith.constant 0 : index
    %c0_13 = arith.constant 0 : index
    %17 = vector.load %arg7[%c0_12, %c0_13] : memref<24x128xbf16, #tpu.memory_space<vmem>>, vector<24x128xbf16>
    %cst_14 = arith.constant dense<0.000000e+00> : vector<16x128xf32>
    %18 = tpu.matmul %16, %17, %cst_14 {dimension_numbers = #tpu.dot_dimension_numbers<[1], [0], [0], [1], [0, 0, 1, 1], [], []>} : vector<16x24xbf16>, vector<24x128xbf16>, vector<16x128xf32> -> vector<16x128xf32>
    %19 = arith.truncf %15 : vector<16x128xf32> to vector<16x128xbf16>
    %c0_15 = arith.constant 0 : index
    %c0_16 = arith.constant 0 : index
    %20 = vector.load %arg8[%c0_15, %c0_16] : memref<128x128xbf16, #tpu.memory_space<vmem>>, vector<128x128xbf16>
    %cst_17 = arith.constant dense<0.000000e+00> : vector<16x128xf32>
    %21 = tpu.matmul %19, %20, %cst_17 {dimension_numbers = #tpu.dot_dimension_numbers<[1], [0], [0], [1], [0, 0, 1, 1], [], []>} : vector<16x128xbf16>, vector<128x128xbf16>, vector<16x128xf32> -> vector<16x128xf32>
    %22 = arith.addf %18, %21 : vector<16x128xf32>
    %c0_18 = arith.constant 0 : index
    %c0_19 = arith.constant 0 : index
    %23 = vector.load %arg9[%c0_18, %c0_19] : memref<1x128xf32, #tpu.memory_space<vmem>>, vector<1x128xf32>
    %24 = vector.broadcast %23 : vector<1x128xf32> to vector<16x128xf32>
    %25 = arith.addf %22, %24 : vector<16x128xf32>
    %cst_20 = arith.constant 0.000000e+00 : f32
    %26 = vector.broadcast %cst_20 : f32 to vector<16x128xf32>
    %27 = arith.maximumf %25, %26 : vector<16x128xf32>
    %28 = arith.truncf %27 : vector<16x128xf32> to vector<16x128xbf16>
    %c0_21 = arith.constant 0 : index
    %c0_22 = arith.constant 0 : index
    %29 = vector.load %arg10[%c0_21, %c0_22] : memref<128x128xbf16, #tpu.memory_space<vmem>>, vector<128x128xbf16>
    %cst_23 = arith.constant dense<0.000000e+00> : vector<16x128xf32>
    %30 = tpu.matmul %28, %29, %cst_23 {dimension_numbers = #tpu.dot_dimension_numbers<[1], [0], [0], [1], [0, 0, 1, 1], [], []>} : vector<16x128xbf16>, vector<128x128xbf16>, vector<16x128xf32> -> vector<16x128xf32>
    %c0_24 = arith.constant 0 : index
    %c0_25 = arith.constant 0 : index
    %31 = vector.load %arg11[%c0_24, %c0_25] : memref<1x128xf32, #tpu.memory_space<vmem>>, vector<1x128xf32>
    %32 = vector.broadcast %31 : vector<1x128xf32> to vector<16x128xf32>
    %33 = arith.addf %30, %32 : vector<16x128xf32>
    %cst_26 = arith.constant 0.000000e+00 : f32
    %34 = vector.broadcast %cst_26 : f32 to vector<16x128xf32>
    %35 = arith.maximumf %33, %34 : vector<16x128xf32>
    %36 = arith.truncf %35 : vector<16x128xf32> to vector<16x128xbf16>
    %c0_27 = arith.constant 0 : index
    %c0_28 = arith.constant 0 : index
    %37 = vector.load %arg12[%c0_27, %c0_28] : memref<128x128xbf16, #tpu.memory_space<vmem>>, vector<128x128xbf16>
    %cst_29 = arith.constant dense<0.000000e+00> : vector<16x128xf32>
    %38 = tpu.matmul %36, %37, %cst_29 {dimension_numbers = #tpu.dot_dimension_numbers<[1], [0], [0], [1], [0, 0, 1, 1], [], []>} : vector<16x128xbf16>, vector<128x128xbf16>, vector<16x128xf32> -> vector<16x128xf32>
    %c0_30 = arith.constant 0 : index
    %c0_31 = arith.constant 0 : index
    %39 = vector.load %arg13[%c0_30, %c0_31] : memref<1x128xf32, #tpu.memory_space<vmem>>, vector<1x128xf32>
    %40 = vector.broadcast %39 : vector<1x128xf32> to vector<16x128xf32>
    %41 = arith.addf %38, %40 : vector<16x128xf32>
    %c0_32 = arith.constant 0 : index
    %c0_33 = arith.constant 0 : index
    %42 = vector.load %arg14[%c0_32, %c0_33] : memref<16x128xf32, #tpu.memory_space<vmem>>, vector<16x128xf32>
    tpu.vector_store %arg14[%c0_32, %c0_33], %41 {strides = array<i32>} : memref<16x128xf32, #tpu.memory_space<vmem>>, vector<16x128xf32>,
    return
  }
  func.func @transform_0(%arg0: i32) -> (i32, i32) {
    %c0_i32 = arith.constant 0 : i32
    %c0_i32_0 = arith.constant 0 : i32
    return %arg0, %c0_i32 : i32, i32
  }
  func.func @transform_1(%arg0: i32) -> (i32, i32) {
    %c0_i32 = arith.constant 0 : i32
    %c0_i32_0 = arith.constant 0 : i32
    return %arg0, %c0_i32 : i32, i32
  }
  func.func @transform_2(%arg0: i32) -> (i32, i32) {
    %c0_i32 = arith.constant 0 : i32
    %c0_i32_0 = arith.constant 0 : i32
    %c0_i32_1 = arith.constant 0 : i32
    return %c0_i32, %c0_i32_0 : i32, i32
  }
  func.func @transform_3(%arg0: i32) -> (i32, i32) {
    %c0_i32 = arith.constant 0 : i32
    %c0_i32_0 = arith.constant 0 : i32
    %c0_i32_1 = arith.constant 0 : i32
    return %c0_i32, %c0_i32_0 : i32, i32
  }
  func.func @transform_4(%arg0: i32) -> (i32, i32) {
    %c0_i32 = arith.constant 0 : i32
    %c0_i32_0 = arith.constant 0 : i32
    %c0_i32_1 = arith.constant 0 : i32
    return %c0_i32, %c0_i32_0 : i32, i32
  }
  func.func @transform_5(%arg0: i32) -> (i32, i32) {
    %c0_i32 = arith.constant 0 : i32
    %c0_i32_0 = arith.constant 0 : i32
    %c0_i32_1 = arith.constant 0 : i32
    return %c0_i32, %c0_i32_0 : i32, i32
  }
  func.func @transform_6(%arg0: i32) -> (i32, i32) {
    %c0_i32 = arith.constant 0 : i32
    %c0_i32_0 = arith.constant 0 : i32
    %c0_i32_1 = arith.constant 0 : i32
    return %c0_i32, %c0_i32_0 : i32, i32
  }
  func.func @transform_7(%arg0: i32) -> (i32, i32) {
    %c0_i32 = arith.constant 0 : i32
    %c0_i32_0 = arith.constant 0 : i32
    %c0_i32_1 = arith.constant 0 : i32
    return %c0_i32, %c0_i32_0 : i32, i32
  }
  func.func @transform_8(%arg0: i32) -> (i32, i32) {
    %c0_i32 = arith.constant 0 : i32
    %c0_i32_0 = arith.constant 0 : i32
    %c0_i32_1 = arith.constant 0 : i32
    return %c0_i32, %c0_i32_0 : i32, i32
  }
  func.func @transform_9(%arg0: i32) -> (i32, i32) {
    %c0_i32 = arith.constant 0 : i32
    %c0_i32_0 = arith.constant 0 : i32
    %c0_i32_1 = arith.constant 0 : i32
    return %c0_i32, %c0_i32_0 : i32, i32
  }
  func.func @transform_10(%arg0: i32) -> (i32, i32) {
    %c0_i32 = arith.constant 0 : i32
    %c0_i32_0 = arith.constant 0 : i32
    %c0_i32_1 = arith.constant 0 : i32
    return %c0_i32, %c0_i32_0 : i32, i32
  }
  func.func @transform_11(%arg0: i32) -> (i32, i32) {
    %c0_i32 = arith.constant 0 : i32
    %c0_i32_0 = arith.constant 0 : i32
    %c0_i32_1 = arith.constant 0 : i32
    return %c0_i32, %c0_i32_0 : i32, i32
  }
  func.func @transform_12(%arg0: i32) -> (i32, i32) {
    %c0_i32 = arith.constant 0 : i32
    %c0_i32_0 = arith.constant 0 : i32
    %c0_i32_1 = arith.constant 0 : i32
    return %c0_i32, %c0_i32_0 : i32, i32
  }
  func.func @transform_13(%arg0: i32) -> (i32, i32) {
    %c0_i32 = arith.constant 0 : i32
    %c0_i32_0 = arith.constant 0 : i32
    return %arg0, %c0_i32 : i32, i32
  }
}

</mosaic_0001>

<bundles_post_ra>
// kernel: tpu_custom_call.1
= control target key start
LH: loop header
LB: loop body
LE: loop exit
PB: predicated region body
PF: predicated region fallthrough
CT: control target
= control target key end

     0   :  { %s2055_s0 = inlined_call_operand.vmem [shape: bf16[64,24], index: 0, kind: input, shape index: {}]   ;;  %s2056_s1 = inlined_call_operand.vmem [shape: f32[64,1], index: 1, kind: input, shape index: {}]   ;;  %s2057_s2 = inlined_call_operand.vmem [shape: f32[1,128], index: 2, kind: input, shape index: {}]   ;;  %s2058_s3 = inlined_call_operand.vmem [shape: f32[1,128], index: 3, kind: input, shape index: {}]   ;;  %s2059_s4 = inlined_call_operand.vmem [shape: bf16[128,128], index: 4, kind: input, shape index: {}]   ;;  %s2060_s5 = inlined_call_operand.vmem [shape: f32[1,128], index: 5, kind: input, shape index: {}]   ;;  %s2061_s6 = inlined_call_operand.hbm [shape: bf16[24,128], index: 6, kind: input, shape index: {}]   ;;  %s2062_s7 = inlined_call_operand.vmem [shape: bf16[128,128], index: 7, kind: input, shape index: {}]   ;;  %s2063_s8 = inlined_call_operand.vmem [shape: f32[1,128], index: 8, kind: input, shape index: {}]   ;;  %s2064_s9 = inlined_call_operand.hbm [shape: bf16[128,128], index: 9, kind: input, shape index: {}]   ;;  %s2065_s10 = inlined_call_operand.vmem [shape: f32[1,128], index: 10, kind: input, shape index: {}]   ;;  %s2066_s11 = inlined_call_operand.hbm [shape: bf16[128,128], index: 11, kind: input, shape index: {}]   ;;  %s2067_s12 = inlined_call_operand.vmem [shape: f32[1,128], index: 12, kind: input, shape index: {}]   ;;  %s2068_s13 = inlined_call_operand.hbm [shape: f32[64,128], index: 13, kind: output, shape index: {}]  }
   0x1   :  { %2081 = sst [smem:[#allocation19_spill]] %s2067_s12 }
   0x2   :  { %2082 = sst [smem:[#allocation20_spill]] %s2068_s13 }
   0x3   :  { %18 = vsyncpa [#allocation3], 0 }
   0x4   :  { %19 = vsyncpa [#allocation6], 0 }
   0x5   :  { %20 = vsyncpa [#allocation4], 0 }
   0x6   :  { %22 = vsyncpa [#allocation4 + $0x1], 0  ;;  %s1728_s25 = smov 0   ;;  %s1730_s26 = smov 0  }
   0x7   :  { %s1732_s27 = smov 0   ;;  %s1734_s28 = smov 0  }
   0x8 LB: > { %2083 = sst [smem:[#allocation12_spill]] %s1633_s25  ;;  %s1749_s29 = sadd.s32 4294967295, %s1645_s28   ;;  %s1645_s28 = sphi %s1734_s28, %s2108_s28   ;;  %s1641_s27 = sphi %s1732_s27, %s2110_s27   ;;  %s1637_s26 = sphi %s1730_s26, %s2112_s26   ;;  %s1633_s25 = sphi %s1728_s25, %s2111_s25  }
   0x9   : > { %2084 = sst [smem:[#allocation13_spill]] %s1641_s27  ;;  %s1188_s30 = sadd.s32 4294967294, %s1645_s28  }
   0xa   : > { %2085 = sst [smem:[#allocation14_spill]] %s1645_s28  ;;  %s1753_s14 = sadd.s32 1, %s1645_s28  }
   0xb   : > { %2086 = sst [smem:[#allocation15_spill]] %s1753_s14  ;;  %s318_s15 = sadd.s32 1, %s1641_s27 }
   0xc   : > { %s315_s16 = ssub.s32 %s1645_s28, %s1753_s14  ;;  %p328_p0 = scmp.ne.s32.totalorder %s1641_s27, %s1637_s26 }
   0xd   : > { %p316_p1 = scmp.eq.s32.totalorder %s315_s16, 0  ;;  %p329_p2 = scmp.eq.s32.totalorder %s1749_s29, 3 }
   0xe   : > { %p334_p3 = scmp.ne.s32.totalorder %s1637_s26, %s1633_s25  ;;  %p335_p4 = scmp.eq.s32.totalorder %s1188_s30, 3 }
   0xf   : > { %s1764_s17 = scalar_select %p316_p1, %s1641_s27, %s318_s15  }
  0x10   : > { %p1766_p5 = por %p329_p2, %p328_p0  ;;  %p1770_p6 = por %p335_p4, %p334_p3 }
  0x11   : > { %2087 = sst [smem:[#allocation16_spill]] %s1764_s17  ;;  %p1189_p7 = scmp.ge.s32.totalorder %s1645_s28, 1 }
  0x12   : > { %s2088_s18 = scalar_select %p1766_p5, 1, 0 }
  0x13   : > { %s2090_s19 = scalar_select %p1770_p6, 1, 0 }
  0x14   : > { %2089 = sst [smem:[#allocation17_spill]] %s2088_s18  ;;  %p342_p8 = scmp.lt.s32.totalorder %s1645_s28, 5 }
  0x15   : > { %2091 = sst [smem:[#allocation18_spill]] %s2090_s19  ;;  %p2074_p9 = scmp.eq.s32.totalorder %s1749_s29, 0 }
  0x16   : > { %p1777_p10 = pnand %p1189_p7, %p342_p8  ;;  %s1647_s21 = smov [#allocation5]  }
  0x17   : > { %s385_s22 = sshll.u32 %s1647_s21, 4  ;;  %s1648_s24 = smov [#allocation2]   ;;  %s1783_s22 = int_to_ptr.vmem [resolvable:$true] %s385_s22 }
  0x18   : > { %s2092_s20 = scalar_select %p1777_p10, 1, 0 }
  0x19   : > { %p1392_p11 = pneg %p1777_p10  ;;  %s366_s30 = sshll.u32 %s1648_s24, 4  ;;  %s1791_s30 = int_to_ptr.vmem [resolvable:$true] %s366_s30 }
  0x1a   : > { %s1649_s15 = smov [#allocation7]   ;;  %s1491_s14 = scalar_lea.hbm %s2064_s9, 1024 }
  0x1b   : > { %p1787_p12 = pnand %p2074_p9, %p1392_p11  ;;  %s1793_s16 = sshll.u32 %s1649_s15, 4  ;;  %s402_s16 = int_to_ptr.vmem [resolvable:$true] %s1793_s16 }
  0x1c   : > { %p1492_p13 = scmp.ne.s32.totalorder %s2064_s9, %s1491_s14  ;;  %p1498_p3 = scmp.lt.u32.totalorder %s1491_s14, %s2064_s9 }
  0x1d   : > { %p1803_p0 = pneg %p1787_p12 }
  0x1f   : > { %p1494_p1 = pnand %p1803_p0, %p1492_p13 }
  0x21   : > { %p1495_p2 = pneg %p1494_p1 }
  0x23   : > { %p1500_p4 = pnand %p1498_p3, %p1495_p2 }
  0x25   : > { %1503 = shalt.err (!%p1500_p4)
}
  0x26   : > { %s1504_s27 = scalar_lea.vmem %s1783_s22, 1024  ;;  %p1512_p9 = scmp.lt.s32.totalorder %s1783_s22, %s1783_s22 }
  0x27   : > { %p1505_p7 = scmp.ne.s32.totalorder %s1783_s22, %s1504_s27  ;;  %p1513_p6 = scmp.lt.s32.totalorder %s1504_s27, %s1504_s27 }
  0x29   : > { %p1507_p8 = pnand %p1505_p7, %p1803_p0  ;;  %p1514_p13 = por %p1513_p6, %p1512_p9 }
  0x2b   : > { %p1508_p11 = pneg %p1507_p8 }
  0x2d   : > { %p1515_p1 = pnand %p1514_p13, %p1508_p11 }
  0x2f   : > { %1518 = shalt.err (!%p1515_p1)
}
  0x30   : > { %s1650_s17 = smov 64   ;;  %s1651_s14 = smov 4  }
  0x31   : > { %1398 = dma.hbm_to_vmem [thread:$0]  (!%p1787_p12), %s2064_s9, 1024, %s1783_s22, [#allocation6], %s1650_s17, %s1650_s17, %s1651_s14  }
  0x32   : > { %s1519_s27 = scalar_lea.hbm %s2061_s6, 192 }
  0x33   : > { %p1520_p6 = scmp.ne.s32.totalorder %s2061_s6, %s1519_s27  ;;  %p1526_p3 = scmp.lt.u32.totalorder %s1519_s27, %s2061_s6 }
  0x35   : > { %p1522_p9 = pnand %p1520_p6, %p1803_p0 }
  0x37   : > { %p1523_p2 = pneg %p1522_p9 }
  0x39   : > { %p1528_p4 = pnand %p1526_p3, %p1523_p2 }
  0x3b   : > { %1531 = shalt.err (!%p1528_p4)
}
  0x3c   : > { %s1532_s22 = scalar_lea.vmem %s1791_s30, 192  ;;  %p1540_p13 = scmp.lt.s32.totalorder %s1791_s30, %s1791_s30 }
  0x3d   : > { %p1533_p7 = scmp.ne.s32.totalorder %s1791_s30, %s1532_s22  ;;  %p1541_p1 = scmp.lt.s32.totalorder %s1532_s22, %s1532_s22 }
  0x3f   : > { %p1535_p8 = pnand %p1533_p7, %p1803_p0  ;;  %p1542_p6 = por %p1541_p1, %p1540_p13 }
  0x41   : > { %p1536_p11 = pneg %p1535_p8 }
  0x43   : > { %p1543_p9 = pnand %p1542_p6, %p1536_p11 }
  0x45   : > { %1546 = shalt.err (!%p1543_p9)
}
  0x46   : > { %1395 = dma.hbm_to_vmem [thread:$0]  (!%p1787_p12), %s2061_s6, 192, %s1791_s30, [#allocation3], %s1650_s17, %s1650_s17, %s1651_s14  }
  0x47   : > { %s1547_s19 = scalar_lea.hbm %s2066_s11, 1024 }
  0x48   : > { %p1548_p2 = scmp.ne.s32.totalorder %s2066_s11, %s1547_s19  ;;  %p1554_p7 = scmp.lt.u32.totalorder %s1547_s19, %s2066_s11 }
  0x4a   : > { %p1550_p3 = pnand %p1548_p2, %p1803_p0 }
  0x4c   : > { %p1551_p4 = pneg %p1550_p3 }
  0x4e   : > { %p1556_p8 = pnand %p1554_p7, %p1551_p4 }
  0x50   : > { %1559 = shalt.err (!%p1556_p8)
}
  0x51   : > { %s1560_s22 = scalar_lea.vmem %s402_s16, 1024  ;;  %p1568_p6 = scmp.lt.s32.totalorder %s402_s16, %s402_s16 }
  0x52   : > { %p1561_p11 = scmp.ne.s32.totalorder %s402_s16, %s1560_s22  ;;  %p1569_p9 = scmp.lt.s32.totalorder %s1560_s22, %s1560_s22 }
  0x54   : > { %p1563_p13 = pnand %p1561_p11, %p1803_p0  ;;  %p1570_p5 = por %p1569_p9, %p1568_p6 }
  0x56   : > { %p1564_p1 = pneg %p1563_p13 }
  0x58   : > { %p1571_p10 = pnand %p1570_p5, %p1564_p1 }
  0x5a   : > { %1574 = shalt.err (!%p1571_p10)
}
  0x5b   : > { %1401 = dma.hbm_to_vmem [thread:$0]  (!%p1787_p12), %s2066_s11, 1024, %s402_s16, [#allocation6], %s1650_s17, %s1650_s17, %s1651_s14  }
  0x5c   : > { %p2095_p2 = scmp.ne.s32.totalorder %s2092_s20, 0 }
  0x5d   : > { %p2096_p0 = scmp.eq.s32.totalorder (!%p2095_p2), %s1749_s29, 0 }
  0x5e   : > { %438 = sbr.rel (%p2095_p2) target bundleno = 1143 (0x477), region = 72 }
  0x65   : > { %1620 = dma.done.wait (%p2096_p0), [#allocation3], 192   ;;  %p2097_p3 = pmov %p2096_p0 }
  0x66   : > { %p2098_p5 = pmov %p2096_p0 }
  0x67   : > { %1622 = vsyncadd (%p2097_p3), [#allocation3], 4294967104 }
  0x68   : > { %1624 = dma.done.wait (%p2098_p5), [#allocation6], 2048   ;;  %p2099_p10 = pmov %p2096_p0 }
  0x69   : > { %s1199_s25 = sshll.u32 %s1749_s29, 1  ;;  %v1652_v0 = vmov 0   ;;  %v1653_v1 = vmov 0.0   ;;  %v1457_v4 = vld [vmem:[%s2059_s4] sm:$0xff]   ;;  %v1458_v5 = vld [vmem:[%s2059_s4 + $0x8] sm:$0xff]   ;;  %v1459_v6 = vld [vmem:[%s2059_s4 + $0x10] sm:$0xff]  }
  0x6a   : > { %1626 = vsyncadd (%p2099_p10), [#allocation6], 4294965248  ;;  %1455 = vset.pattern.permute.xlu0 %v1652_v0  ;;  %p496_p12 = scmp.lt.s32.totalorder %s1199_s25, 7  ;;  %1290 = vmatprep.subr.bf16.mxu0 %v1653_v1  ;;  %v1460_v7 = vld [vmem:[%s2059_s4 + $0x18] sm:$0xff]   ;;  %vm1654_vm0 = vmmov 0   ;;  %v1465_v8 = vld [vmem:[%s2062_s7] sm:$0xff]  }
  0x6b   : > { %1310 = vmatprep.subr.bf16.mxu1 %v1653_v1  ;;  %1291 = vmatpush3.bf16.msra.mxu0 %v1457_v4  ;;  %v1466_v9 = vld [vmem:[%s2062_s7 + $0x8] sm:$0xff]   ;;  %v1461_v10 = vld [vmem:[%s2059_s4 + $0x20] sm:$0xff]   ;;  %v1467_v11 = vld [vmem:[%s2062_s7 + $0x10] sm:$0xff]   ;;  %vm783_vm1 = vcmask 1043456   ;;  %vm779_vm2 = vcmask 195584   ;;  %s2100_s13 = sld [smem:[#allocation19_spill]] }
  0x6c   : > { %s2114_s25 = smov (!%p496_p12, %s1199_s25), 7  ;;  %1292 = vmatprep.subr.bf16.mxu0 %v1653_v1  ;;  %1306 = vmatprep.mubr.msk.bf16.mxu0 %vm1654_vm0, %v1653_v1  ;;  %v1462_v12 = vld [vmem:[%s2059_s4 + $0x28] sm:$0xff]   ;;  %v1468_v13 = vld [vmem:[%s2062_s7 + $0x18] sm:$0xff]   ;;  %v1463_v14 = vld [vmem:[%s2059_s4 + $0x30] sm:$0xff]   ;;  %s1250_s21 = sshll.u32 %s1749_s29, 8 }
  0x6d   : > { %s1200_s20 = sshll.u32 %s2114_s25, 2  ;;  %s1202_s23 = sshll.u32 %s2114_s25, 3  ;;  %1326 = vmatprep.mubr.msk.bf16.mxu1 %vm1654_vm0, %v1653_v1  ;;  %1311 = vmatpush3.bf16.msra.mxu1 %v1465_v8  ;;  %v1469_v15 = vld [vmem:[%s2062_s7 + $0x20] sm:$0xff]   ;;  %v1464_v16 = vld [vmem:[%s2059_s4 + $0x38] sm:$0xff]   ;;  %v1470_v17 = vld [vmem:[%s2062_s7 + $0x28] sm:$0xff]  }
  0x6e   : > { %s1891_s14 = scalar_lea.vmem %s2055_s0, %s1200_s20  ;;  %s505_s18 = scalar_lea.vmem %s2056_s1, %s1202_s23  ;;  %1312 = vmatprep.subr.bf16.mxu1 %v1653_v1  ;;  %v1203_v18 = vld [vmem:[%s2057_s2] ss:$0 sm:$0xff]  ;;  %v1472_v30 = vld [vmem:[%s2062_s7 + $0x30] sm:$0xff]   ;;  %v1473_v31 = vld [vmem:[#allocation2 + $0x8] ss:$0 sps:$4 sm:$0xff]  }
  0x6f   : > { %v509_v2 = vld [vmem:[%s505_s18] sm:$0xff]  ;;  %v510_v3 = vld [vmem:[%s505_s18 + $0x8] sm:$0xff]  ;;  %1293 = vmatpush3.bf16.msra.mxu0 %v1458_v5  ;;  %v785_v33 = vsel %vm783_vm1, %v1473_v31, 0  ;;  %v1474_v34 = vld [vmem:[%s2062_s7 + $0x38] sm:$0xff]   ;;  %s492_s20 = sand.u32 1, %s1637_s26   ;;  %s2101_s18 = sld [smem:[#allocation17_spill]] }
  0x70   : > { %514 = vperm.xlu0 %1455, %v509_v2   ;;  %1294 = vmatprep.subr.bf16.mxu0 %v1653_v1  ;;  %v1204_v21 = vld [vmem:[%s2058_s3] ss:$0 sm:$0xff]  ;;  %v1475_v42 = vld [vmem:[#allocation5] sm:$0xff]   ;;  %v1476_v44 = vld [vmem:[#allocation5 + $0x8] sm:$0xff]   ;;  %s1198_s23 = sshll.u32 %s492_s20, 4  ;;  %s2014_s22 = scalar_lea.sflag [#allocation4], %s492_s20 }
  0x71   : > { %1313 = vmatpush3.bf16.msra.mxu1 %v1466_v9  ;;  %v1471_v28 = vld [vmem:[#allocation2] sm:$0xff]   ;;  %v1479_v47 = vld [vmem:[#allocation5 + $0x20] sm:$0xff]   ;;  %v1480_v50 = vld [vmem:[#allocation5 + $0x28] sm:$0xff]   ;;  %s494_s28 = scalar_lea.vmem [#allocation8], %s1198_s23  ;;  %s1655_s30 = smov [#allocation8]  }
  0x72   : > { %1314 = vmatprep.subr.bf16.mxu1 %v1653_v1  ;;  %v1456_v32 = vld [vmem:[%s1891_s14] sm:$0xff]   ;;  %v1483_v55 = vld [vmem:[#allocation7] sm:$0xff]   ;;  %v1484_v56 = vld [vmem:[#allocation7 + $0x8] sm:$0xff]   ;;  %s1083_s19 = sshll.u32 %s494_s28, 4  ;;  %s2102_s14 = sld [smem:[#allocation20_spill]]  ;;  %s2007_s19 = int_to_ptr.vmem [resolvable:$true] %s1083_s19 }
  0x73   : > { %1295 = vmatpush3.bf16.msra.mxu0 %v1459_v6  ;;  %v1205_v35 = vld [vmem:[%s2060_s5] ss:$0 sm:$0xff]  ;;  %v1478_v46 = vld [vmem:[#allocation5 + $0x18] sm:$0xff]   ;;  %v1487_v59 = vld [vmem:[#allocation7 + $0x20] sm:$0xff]   ;;  %s1575_s29 = scalar_lea.vmem %s2007_s19, 256  ;;  %s1579_s12 = sshll.u32 %s1655_s30, 4  ;;  %s1580_s12 = int_to_ptr.vmem [resolvable:$false] %s1579_s12 }
  0x74   : > { %519 = vperm.xlu0 %1455, %v510_v3   ;;  %1296 = vmatprep.subr.bf16.mxu0 %v1653_v1  ;;  %v1477_v45 = vld [vmem:[#allocation5 + $0x10] sm:$0xff]   ;;  %v1482_v54 = vld [vmem:[#allocation5 + $0x38] sm:$0xff]   ;;  %v1488_v60 = vld [vmem:[#allocation7 + $0x28] sm:$0xff]   ;;  %p1576_p4 = scmp.ne.s32.totalorder %s2007_s19, %s1575_s29  ;;  %s1581_s25 = scalar_lea.vmem %s1580_s12, 512 }
  0x75   : > { %1315 = vmatpush3.bf16.msra.mxu1 %v1467_v11  ;;  %v1481_v53 = vld [vmem:[#allocation5 + $0x30] sm:$0xff]   ;;  %v1486_v58 = vld [vmem:[#allocation7 + $0x18] sm:$0xff]   ;;  %p2103_p7 = scmp.ne.s32.totalorder %s2101_s18, 0  ;;  %p1582_p13 = scmp.lt.s32.totalorder %s2007_s19, %s1580_s12 }
  0x76   : > { %1316 = vmatprep.subr.bf16.mxu1 %v1653_v1  ;;  %v1485_v57 = vld [vmem:[#allocation7 + $0x10] sm:$0xff]   ;;  %v1490_v11 = vld [vmem:[#allocation7 + $0x38] sm:$0xff]   ;;  %p1583_p1 = scmp.lt.s32.totalorder %s1581_s25, %s1575_s29 }
  0x77   : > { %1297 = vmatpush3.bf16.msra.mxu0 %v1460_v7  ;;  %v1226_v62 = vld [vmem:[%s2063_s8] ss:$0 sm:$0xff]  ;;  %p1577_p8 = pnand %p1576_p4, %p2103_p7 }
  0x78   : > { %1298 = vmatprep.subr.bf16.mxu0 %v1653_v1  ;;  %s2012_s27 = scalar_lea.hbm %s2102_s14, %s1250_s21  ;;  %p1584_p6 = por %p1583_p1, %p1582_p13 }
  0x79   : > { %1317 = vmatpush3.bf16.msra.mxu1 %v1468_v13  ;;  %p1578_p11 = pneg %p1577_p8 }
  0x7a   : > { %1318 = vmatprep.subr.bf16.mxu1 %v1653_v1 }
  0x7b   : > { %1299 = vmatpush3.bf16.msra.mxu0 %v1461_v10  ;;  %v1489_v10 = vld [vmem:[#allocation7 + $0x30] sm:$0xff]   ;;  %p1585_p9 = pnand %p1584_p6, %p1578_p11 }
  0x7c   : > { %1300 = vmatprep.subr.bf16.mxu0 %v1653_v1 }
  0x7d   : > { %1319 = vmatpush3.bf16.msra.mxu1 %v1469_v15 }
  0x7e   : > { %1320 = vmatprep.subr.bf16.mxu1 %v1653_v1 }
  0x7f   : > { %1301 = vmatpush3.bf16.msra.mxu0 %v1462_v12  ;;  %v1227_v12 = vld [vmem:[%s2065_s10] ss:$0 sm:$0xff] }
  0x80   : > { %1302 = vmatprep.subr.bf16.mxu0 %v1653_v1 }
  0x81   : > { %1321 = vmatpush3.bf16.msra.mxu1 %v1470_v17 }
  0x82   : > { %1322 = vmatprep.subr.bf16.mxu1 %v1653_v1 }
  0x83   : > { %1303 = vmatpush3.bf16.msra.mxu0 %v1463_v14 }
  0x84   : > { %1304 = vmatprep.subr.bf16.mxu0 %v1653_v1 }
  0x85   : > { %1323 = vmatpush3.bf16.msra.mxu1 %v1472_v30 }
  0x86   : > { %1324 = vmatprep.subr.bf16.mxu1 %v1653_v1 }
  0x87   : > { %1305 = vmatpush3.bf16.msra.mxu0 %v1464_v16 }
  0x88   : > { %1330 = vmatprep.subr.bf16.mxu0 %v1653_v1 }
  0x89   : > { %1325 = vmatpush3.bf16.msra.mxu1 %v1474_v34 }
  0x8a   : > { %1338 = vmatprep.subr.bf16.mxu1 %v1653_v1 }
  0xef   : > { %v515_v19 = vpop.permute.xlu0 %514 }
  0xf0   : > { %v528_v20 = vmul.f32 %v1203_v18, %v515_v19 }
  0xf2   : > { %v537_v23 = vadd.f32 %v1204_v21, %v528_v20 }
  0xf3   : > { %v520_v22 = vpop.permute.xlu0 %519 }
  0xf4   : > { %v529_v24 = vmul.f32 %v1203_v18, %v520_v22  ;;  %v539_v26 = vmax.f32 %v537_v23, 0.0 }
  0xf6   : > { %v538_v25 = vadd.f32 %v1204_v21, %v529_v24 }
  0xf8   : > { %v540_v27 = vmax.f32 %v538_v25, 0.0 }
  0xfa   : > { %v541_v29 = vpack.c.bf16 %v540_v27, %v539_v26 }
  0xfc   : > { %1307 = vmatmul.mubr.bf16.vlgmr.msra.gmra.mrb[0].mxu0 %v541_v29 }
  0xfd   : > { %1331 = vmatpush3.bf16.msra.mxu0 %v1471_v28  ;;  %1334 = vmatprep.mubr.msk.bf16.mxu0 %vm1654_vm0, %v1653_v1 }
  0xfe   : > { %1332 = vmatprep.subr.bf16.mxu0 %v1653_v1 }
 0x101   : > { %1333 = vmatpush3.bf16.msra.mxu0 %v785_v33 }
 0x102   : > { %1358 = vmatprep.subr.bf16.mxu0 %v1653_v1 }
 0x104   : > { %1335 = vmatmul.mubr.msk.bf16.vlgmr.msra.gmra.mrb[4].mxu0 %vm779_vm2, %v1456_v32 }
 0x105   : > { %1374 = vmatprep.mubr.msk.bf16.mxu0 %vm1654_vm0, %v1653_v1  ;;  %1359 = vmatpush3.bf16.msra.mxu0 %v1483_v55 }
 0x106   : > { %1360 = vmatprep.subr.bf16.mxu0 %v1653_v1 }
 0x109   : > { %1361 = vmatpush3.bf16.msra.mxu0 %v1484_v56 }
 0x10a   : > { %1362 = vmatprep.subr.bf16.mxu0 %v1653_v1 }
 0x10d   : > { %1363 = vmatpush3.bf16.msra.mxu0 %v1485_v57 }
 0x10e   : > { %1364 = vmatprep.subr.bf16.mxu0 %v1653_v1 }
 0x111   : > { %1365 = vmatpush3.bf16.msra.mxu0 %v1486_v58 }
 0x112   : > { %1366 = vmatprep.subr.bf16.mxu0 %v1653_v1 }
 0x115   : > { %1367 = vmatpush3.bf16.msra.mxu0 %v1487_v59 }
 0x116   : > { %1368 = vmatprep.subr.bf16.mxu0 %v1653_v1 }
 0x119   : > { %1369 = vmatpush3.bf16.msra.mxu0 %v1488_v60 }
 0x11a   : > { %1370 = vmatprep.subr.bf16.mxu0 %v1653_v1 }
 0x11d   : > { %1371 = vmatpush3.bf16.msra.mxu0 %v1489_v10 }
 0x11e   : > { %1372 = vmatprep.subr.bf16.mxu0 %v1653_v1 }
 0x121   : > { %1373 = vmatpush3.bf16.msra.mxu0 %v1490_v11 }
 0x1cf   : > { %v647_v36 = vpop.f32.mrb[0].mxu0 }
 0x1d0   : > { %v1308_v37 = vpop.f32.mrb[1].mxu0  ;;  %v648_v39 = vadd.f32 %v1205_v35, %v647_v36 }
 0x1d1   : > { %v650_v38 = vpop.f32.mrb[2].mxu0 }
 0x1d2   : > { %v651_v40 = vadd.f32 %v1205_v35, %v650_v38  ;;  %v1309_v41 = vpop.f32.mrb[3].mxu0 }
 0x1d4   : > { %v659_v43 = vpack.c.bf16 %v651_v40, %v648_v39 }
 0x1d6   : > { %1327 = vmatmul.mubr.bf16.vlgmr.msra.gmra.mrb[0].mxu1 %v659_v43 }
 0x1d7   : > { %1339 = vmatpush3.bf16.msra.mxu1 %v1475_v42  ;;  %1354 = vmatprep.mubr.msk.bf16.mxu1 %vm1654_vm0, %v1653_v1  ;;  %v821_v48 = vpop.f32.mrb[4].mxu0 }
 0x1d8   : > { %1340 = vmatprep.subr.bf16.mxu1 %v1653_v1  ;;  %v1336_v49 = vpop.f32.mrb[5].mxu0 }
 0x1d9   : > { %v824_v51 = vpop.f32.mrb[6].mxu0 }
 0x1da   : > { %v1337_v52 = vpop.f32.mrb[7].mxu0 }
 0x1db   : > { %1341 = vmatpush3.bf16.msra.mxu1 %v1476_v44 }
 0x1dc   : > { %1342 = vmatprep.subr.bf16.mxu1 %v1653_v1 }
 0x1df   : > { %1343 = vmatpush3.bf16.msra.mxu1 %v1477_v45 }
 0x1e0   : > { %1344 = vmatprep.subr.bf16.mxu1 %v1653_v1 }
 0x1e3   : > { %1345 = vmatpush3.bf16.msra.mxu1 %v1478_v46 }
 0x1e4   : > { %1346 = vmatprep.subr.bf16.mxu1 %v1653_v1 }
 0x1e7   : > { %1347 = vmatpush3.bf16.msra.mxu1 %v1479_v47 }
 0x1e8   : > { %1348 = vmatprep.subr.bf16.mxu1 %v1653_v1 }
 0x1eb   : > { %1349 = vmatpush3.bf16.msra.mxu1 %v1480_v50 }
 0x1ec   : > { %1350 = vmatprep.subr.bf16.mxu1 %v1653_v1 }
 0x1ef   : > { %1351 = vmatpush3.bf16.msra.mxu1 %v1481_v53 }
 0x1f0   : > { %1352 = vmatprep.subr.bf16.mxu1 %v1653_v1  ;;  %v1236_v1 = vld [vmem:[%s2100_s13] ss:$0 sm:$0xff] }
 0x1f3   : > { %1353 = vmatpush3.bf16.msra.mxu1 %v1482_v54 }
 0x2a9   : > { %v758_v61 = vpop.f32.mrb[0].mxu1 }
 0x2aa   : > { %v822_v63 = vadd.f32 %v821_v48, %v758_v61  ;;  %v1328_v0 = vpop.f32.mrb[1].mxu1 }
 0x2ab   : > { %v761_v2 = vpop.f32.mrb[2].mxu1 }
 0x2ac   : > { %v835_v3 = vadd.f32 %v1226_v62, %v822_v63  ;;  %v825_v4 = vadd.f32 %v824_v51, %v761_v2  ;;  %v1329_v5 = vpop.f32.mrb[3].mxu1 }
 0x2ae   : > { %v836_v6 = vadd.f32 %v1226_v62, %v825_v4  ;;  %v837_v7 = vmax.f32 %v835_v3, 0.0 }
 0x2b0   : > { %v838_v8 = vmax.f32 %v836_v6, 0.0 }
 0x2b2   : > { %v839_v9 = vpack.c.bf16 %v838_v8, %v837_v7 }
 0x2b4   : > { %1355 = vmatmul.mubr.bf16.vlgmr.msra.gmra.mrb[4].mxu1 %v839_v9 }
 0x387   : > { %v945_v13 = vpop.f32.mrb[4].mxu1 }
 0x388   : > { %v946_v14 = vadd.f32 %v1227_v12, %v945_v13  ;;  %v1356_v15 = vpop.f32.mrb[5].mxu1 }
 0x389   : > { %v948_v16 = vpop.f32.mrb[6].mxu1 }
 0x38a   : > { %v949_v17 = vadd.f32 %v1227_v12, %v948_v16  ;;  %v1357_v18 = vpop.f32.mrb[7].mxu1  ;;  %v952_v19 = vmax.f32 %v946_v14, 0.0 }
 0x38c   : > { %v953_v20 = vmax.f32 %v949_v17, 0.0 }
 0x38e   : > { %v954_v21 = vpack.c.bf16 %v953_v20, %v952_v19 }
 0x390   : > { %1375 = vmatmul.mubr.bf16.vlgmr.msra.gmra.mrb[8].mxu0 %v954_v21 }
 0x463   : > { %v1060_v22 = vpop.f32.mrb[8].mxu0 }
 0x464   : > { %v1061_v23 = vadd.f32 %v1236_v1, %v1060_v22  ;;  %v1376_v24 = vpop.f32.mrb[9].mxu0 }
 0x465   : > { %v1063_v25 = vpop.f32.mrb[10].mxu0 }
 0x466   : > { %1067 = vst [vmem:[%s494_s28] sm:$0xff] %v1061_v23  ;;  %v1064_v26 = vadd.f32 %v1236_v1, %v1063_v25  ;;  %v1377_v27 = vpop.f32.mrb[11].mxu0 }
 0x468   : > { %1068 = vst [vmem:[%s494_s28 + $0x8] sm:$0xff] %v1064_v26 }
 0x469   : > { %1588 = shalt.err (!%p1585_p9)
}
 0x46a   : > { %s1589_s20 = scalar_lea.hbm %s2012_s27, 256  ;;  %s1593_s17 = scalar_lea.hbm %s2102_s14, 1024 }
 0x46b   : > { %p1590_p2 = scmp.ne.s32.totalorder %s2012_s27, %s1589_s20  ;;  %p1594_p5 = scmp.lt.u32.totalorder %s2012_s27, %s2102_s14 }
 0x46c   : > { %p1595_p10 = scmp.lt.u32.totalorder %s1593_s17, %s1589_s20  ;;  %p1597_p4 = scmp.lt.u32.totalorder %s1589_s20, %s2012_s27 }
 0x46d   : > { %p1591_p0 = pnand %p1590_p2, %p2103_p7 }
 0x46e   : > { %p1596_p12 = por %p1595_p10, %p1594_p5 }
 0x46f   : > { %p1592_p3 = pneg %p1591_p0 }
 0x470   : > { %p1598_p8 = por %p1597_p4, %p1596_p12 }
 0x472   : > { %p1599_p11 = pnand %p1598_p8, %p1592_p3 }
 0x474   : > { %1602 = shalt.err (!%p1599_p11)
}
 0x475   : > { %s1656_s21 = smov 128   ;;  %s1657_s24 = smov 8  }
 0x476   : > { %1390 = dma.vmem_to_hbm [thread:$0]  (%p2103_p7), %s2007_s19, 256, %s2012_s27, %s2014_s22, %s1656_s21, %s1656_s21, %s1657_s24  }
 0x477 PF: > { %s2104_s15 = sld [smem:[#allocation14_spill]]  ;;  %s2105_s29 = sld [smem:[#allocation12_spill]] }
 0x478   : > { %s2106_s30 = sld [smem:[#allocation18_spill]] }
 0x47d   : > { %p1412_p13 = scmp.ge.s32.totalorder %s2104_s15, 2  ;;  %s1098_s12 = sand.u32 1, %s2105_s29  }
 0x47e   : > { %p2107_p1 = scmp.ne.s32.totalorder %s2106_s30, 0  ;;  %s1099_s25 = scalar_lea.sflag [#allocation4], %s1098_s12 }
 0x480   : > { %p1403_p6 = pnand %p1412_p13, %p2107_p1 }
 0x482   : > { %1628 = dma.done.wait (!%p1403_p6), %s1099_s25, 256  }
 0x483   : > { %1630 = vsyncadd (!%p1403_p6), %s1099_s25, 4294967040  ;;  %s2108_s28 = sld [smem:[#allocation15_spill]]  ;;  %s2109_s20 = sld [smem:[#allocation13_spill]] }
 0x484   : > { %s2110_s27 = sld [smem:[#allocation16_spill]]  ;;  %s2111_s25 = smov %s1637_s26 }
 0x489   : > { %p25_p9 = scmp.ge.s32.totalorder %s2108_s28, 6   ;;  %s2112_s26 = smov %s2109_s20 }
 0x48b   :  { %27 = sbr.rel (!%p25_p9) target bundleno = 8 (0x8), region = 123 }
 0x492   :  { %1104 = vsyncpa [#allocation3], 1 }
 0x493   :  { %1106 = vsyncpa [#allocation3 + $0x1], 1 }
 0x494   :  { %1107 = vsyncpa [#allocation6], 1 }
 0x495   :  { %1108 = vsyncpa [#allocation4], 1 }
 0x496   :  { %1110 = vsyncpa [#allocation4 + $0x1], 1 }

</bundles_post_ra>
